<compile_context>
chip_gen: v7x
topology: tpu7x:2x2x1
jax: 0.10.0
libtpu: 0.0.40
codegen_flags: <defaults>
</compile_context>

<pallas_src>
import jax
import jax.numpy as jnp
from jax.experimental import pallas as pl
from jax.experimental.pallas import tpu as pltpu


def _to_grayscale_kernel(x_ref, o_ref):
    # x_ref: (C, TL) VMEM tile of one batch element (channels on sublanes,
    #        flattened spatial on lanes).
    # o_ref: (C_out, TL) output tile (C_out = 1, or 3 if keep_channels).
    x = x_ref[...].astype(jnp.float32)
    c = x.shape[0]
    # Sum over channels (XLU sublane reduction) then multiply by the scalar
    # reciprocal 1/C (compile-time constant) instead of a per-element divide.
    gray = jnp.sum(x, axis=0, keepdims=True) * (1.0 / c)          # (1, TL) f32
    o_ref[...] = jnp.broadcast_to(gray, o_ref.shape).astype(o_ref.dtype)


def _pick_tile(L: int, bytes_per_lane: int, target_bytes: int = 2 << 20) -> int:
    """Largest tile length TL that divides L, is a multiple of 128 (or == L),
    and keeps the per-step input slab around `target_bytes`."""
    if L % 128 != 0 or L * bytes_per_lane <= target_bytes:
        return L
    max_tl = max(128, (target_bytes // bytes_per_lane) // 128 * 128)
    for tl in range(min(max_tl, L), 0, -128):
        if L % tl == 0:
            return tl
    return L


def to_grayscale(image: jax.Array, keep_channels: bool) -> jax.Array:
    """image: (N, C, H, W). Returns (N, 1, H, W) or (N, 3, H, W) if keep_channels."""
    N, C, H, W = image.shape
    L = H * W
    c_out = 3 if keep_channels else 1

    x = image.reshape(N, C, L)  # lane-dense spatial axis
    tl = _pick_tile(L, C * x.dtype.itemsize)
    grid = (N, L // tl)

    out = pl.pallas_call(
        _to_grayscale_kernel,
        out_shape=jax.ShapeDtypeStruct((N, c_out, L), image.dtype),
        grid_spec=pltpu.PrefetchScalarGridSpec(
            num_scalar_prefetch=0,
            grid=grid,
            in_specs=[
                # Leading batch dim squeezed away -> kernel sees (C, TL).
                pl.BlockSpec((None, C, tl), lambda n, l: (n, 0, l)),
            ],
            out_specs=pl.BlockSpec((None, c_out, tl), lambda n, l: (n, 0, l)),
        ),
        compiler_params=pltpu.CompilerParams(
            # No accumulator; every (n, l) tile is independent.
            dimension_semantics=("parallel", "parallel"),
        ),
    )(x)

    return out.reshape(N, c_out, H, W)


if __name__ == "__main__":
    key = jax.random.PRNGKey(0)
    N, C, H, W = 2, 4, 16, 16
    image = jax.random.uniform(key, (N, C, H, W), dtype=jnp.float32)

    # keep_channels = True path (repeat gray to 3 channels)
    out3 = jax.block_until_ready(to_grayscale(image, keep_channels=True))
    ref1 = jnp.mean(image, axis=1, keepdims=True)
    ref3 = jnp.repeat(ref1, 3, axis=1)
    assert out3.shape == (N, 3, H, W) and out3.dtype == image.dtype
    assert jnp.allclose(out3, ref3, rtol=1e-6, atol=1e-6)

    # keep_channels = False path (single gray channel)
    out1 = jax.block_until_ready(to_grayscale(image, keep_channels=False))
    assert out1.shape == (N, 1, H, W) and out1.dtype == image.dtype
    assert jnp.allclose(out1, ref1, rtol=1e-6, atol=1e-6)

    print("KERNEL_OK")
</pallas_src>

<mosaic_0001>
module attributes {stable_mosaic.version = 11 : i64} {
  func.func @_to_grayscale_kernel(%arg0: i32, %arg1: i32, %arg2: memref<1x4x256xf32, #tpu.memory_space<vmem>>, %arg3: memref<1x3x256xf32, #tpu.memory_space<vmem>>) attributes {dimension_semantics = [#tpu.dimension_semantics<parallel>, #tpu.dimension_semantics<parallel>], iteration_bounds = array<i64: 2, 1>, scalar_prefetch = 0 : i64, scratch_operands = 0 : i64, tpu.core_type = #tpu.core_type<tc>, window_params = [{transform_indices = @transform_0, window_bounds = array<i64: 1, 4, 256>}, {transform_indices = @transform_1, window_bounds = array<i64: 1, 3, 256>}]} {
    %c0 = arith.constant 0 : index
    %c0_0 = arith.constant 0 : index
    %c0_1 = arith.constant 0 : index
    %0 = vector.load %arg2[%c0, %c0_0, %c0_1] : memref<1x4x256xf32, #tpu.memory_space<vmem>>, vector<1x4x256xf32>
    %1 = vector.shape_cast %0 : vector<1x4x256xf32> to vector<4x256xf32>
    %cst = arith.constant dense<0.000000e+00> : vector<256xf32>
    %2 = vector.multi_reduction <add>, %1, %cst [0] : vector<4x256xf32> to vector<256xf32>
    %3 = vector.shape_cast %2 : vector<256xf32> to vector<1x256xf32>
    %cst_2 = arith.constant 2.500000e-01 : f32
    %4 = vector.broadcast %cst_2 : f32 to vector<1x256xf32>
    %5 = arith.mulf %3, %4 : vector<1x256xf32>
    %6 = vector.shape_cast %5 : vector<1x256xf32> to vector<1x256xf32>
    %7 = vector.broadcast %6 : vector<1x256xf32> to vector<3x256xf32>
    %c0_3 = arith.constant 0 : index
    %c0_4 = arith.constant 0 : index
    %c0_5 = arith.constant 0 : index
    %8 = vector.load %arg3[%c0_3, %c0_4, %c0_5] : memref<1x3x256xf32, #tpu.memory_space<vmem>>, vector<1x3x256xf32>
    %9 = vector.shape_cast %8 : vector<1x3x256xf32> to vector<3x256xf32>
    %10 = vector.shape_cast %7 : vector<3x256xf32> to vector<1x3x256xf32>
    tpu.vector_store %arg3[%c0_3, %c0_4, %c0_5], %10 {strides = array<i32>} : memref<1x3x256xf32, #tpu.memory_space<vmem>>, vector<1x3x256xf32>,
    return
  }
  func.func @transform_0(%arg0: i32, %arg1: i32) -> (i32, i32, i32) {
    %c0_i32 = arith.constant 0 : i32
    %c0_i32_0 = arith.constant 0 : i32
    return %arg0, %c0_i32, %arg1 : i32, i32, i32
  }
  func.func @transform_1(%arg0: i32, %arg1: i32) -> (i32, i32, i32) {
    %c0_i32 = arith.constant 0 : i32
    %c0_i32_0 = arith.constant 0 : i32
    return %arg0, %c0_i32, %arg1 : i32, i32, i32
  }
}

</mosaic_0001>

<bundles_post_ra>
// kernel: tpu_custom_call.1
= control target key start
LH: loop header
LB: loop body
LE: loop exit
PB: predicated region body
PF: predicated region fallthrough
CT: control target
= control target key end

     0   :  { %6 = vsyncpa [#allocation3], 0  ;;  %s573_s0 = inlined_call_operand.hbm [shape: f32[2,4,256], index: 0, kind: input, shape index: {}]   ;;  %s574_s1 = inlined_call_operand.vmem [shape: f32[2,3,256], index: 1, kind: output, shape index: {}]  }
   0x1   :  { %8 = vsyncpa [#allocation3 + $0x1], 0  ;;  %s448_s6 = smov 0   ;;  %s450_s7 = smov 0  }
   0x2   :  { %s452_s8 = smov 0   ;;  %s454_s9 = smov 0  }
   0x3   :  { %s456_s10 = smov 0   ;;  %s458_s11 = smov 0  }
   0x4 LB: > { %s284_s12 = sadd.s32 4294967295, %s435_s11   ;;  %s26_s13 = sadd.s32 1, %s431_s10  ;;  %s435_s11 = sphi %s458_s11, %s14_s11   ;;  %s431_s10 = sphi %s456_s10, %s584_s10   ;;  %s427_s9 = sphi %s454_s9, %s583_s9   ;;  %s423_s8 = sphi %s452_s8, %s582_s8   ;;  %s419_s7 = sphi %s450_s7, %s581_s7   ;;  %s415_s6 = sphi %s448_s6, %s580_s6  }
   0x5   : > { %p28_p0 = scmp.ge.s32.totalorder %s26_s13, 2  ;;  %s35_s14 = sadd.s32 1, %s423_s8 }
   0x6   : > { %p42_p1 = scmp.ne.s32.totalorder %s423_s8, %s419_s7  ;;  %p43_p2 = scmp.eq.s32.totalorder %s435_s11, 0 }
   0x7   : > { %s586_s13 = smov (%p28_p0, %s26_s13), 0  ;;  %p48_p4 = scmp.ne.s32.totalorder %s419_s7, %s415_s6 }
   0x8   : > { %p484_p3 = por %p43_p2, %p42_p1  ;;  %s30_s16 = ssub.s32 %s431_s10, %s586_s13 }
   0x9   : > { %p49_p5 = scmp.eq.s32.totalorder %s284_s12, 0  ;;  %p33_p6 = scmp.eq.s32.totalorder %s30_s16, 0 }
   0xa   : > { %p305_p8 = scmp.lt.s32.totalorder %s435_s11, 2  ;;  %s100_s19 = sand.u32 1, %s423_s8  }
   0xb   : > { %p491_p7 = por %p49_p5, %p48_p4  ;;  %s297_s20 = sshll.u32 %s431_s10, 7 }
   0xc   : > { %s497_s18 = scalar_select %p33_p6, %s423_s8, %s35_s14  }
   0xd   : > { %s288_s21 = sshll.u32 %s100_s19, 3  ;;  %s504_s24 = scalar_lea.hbm %s573_s0, %s297_s20 }
   0xe   : > { %s104_s25 = scalar_lea.vmem [#allocation2], %s288_s21  ;;  %p508_p9 = pnand %p305_p8, %p484_p3 }
   0xf   : > { %s114_s26 = sshll.u32 %s104_s25, 4  ;;  %s101_s28 = scalar_lea.sflag [#allocation3], %s100_s19  ;;  %s512_s26 = int_to_ptr.vmem [resolvable:$true] %s114_s26 }
  0x10   : > { %s355_s29 = scalar_lea.hbm %s504_s24, 128  ;;  %p357_p13 = pneg %p508_p9 }
  0x11   : > { %p356_p12 = scmp.ne.s32.totalorder %s504_s24, %s355_s29  ;;  %s360_s3 = scalar_lea.hbm %s573_s0, 256 }
  0x12   : > { %p361_p2 = scmp.lt.u32.totalorder %s504_s24, %s573_s0  ;;  %p362_p3 = scmp.lt.u32.totalorder %s360_s3, %s355_s29 }
  0x13   : > { %p358_p0 = pnand %p357_p13, %p356_p12  ;;  %p364_p5 = scmp.lt.u32.totalorder %s355_s29, %s504_s24 }
  0x14   : > { %p363_p4 = por %p362_p3, %p361_p2 }
  0x15   : > { %p359_p1 = pneg %p358_p0 }
  0x16   : > { %p365_p6 = por %p364_p5, %p363_p4 }
  0x18   : > { %p366_p8 = pnand %p365_p6, %p359_p1 }
  0x1a   : > { %369 = shalt.err (!%p366_p8)
}
  0x1b   : > { %s370_s6 = scalar_lea.vmem %s512_s26, 128  ;;  %s437_s12 = smov [#allocation2]  }
  0x1c   : > { %p371_p12 = scmp.ne.s32.totalorder %s512_s26, %s370_s6  ;;  %s375_s14 = sshll.u32 %s437_s12, 4  ;;  %s376_s14 = int_to_ptr.vmem [resolvable:$false] %s375_s14 }
  0x1d   : > { %s377_s15 = scalar_lea.vmem %s376_s14, 256  ;;  %p378_p11 = scmp.lt.s32.totalorder %s512_s26, %s376_s14 }
  0x1e   : > { %p373_p0 = pnand %p371_p12, %p357_p13  ;;  %p379_p2 = scmp.lt.s32.totalorder %s377_s15, %s370_s6 }
  0x20   : > { %p374_p10 = pneg %p373_p0  ;;  %p380_p3 = por %p379_p2, %p378_p11 }
  0x22   : > { %p381_p4 = pnand %p380_p3, %p374_p10 }
  0x24   : > { %384 = shalt.err (!%p381_p4)
}
  0x25   : > { %304 = dma.hbm_to_vmem [thread:$0]  (!%p508_p9), %s504_s24, 128, %s512_s26, %s101_s28  }
  0x26   : > { %p578_p1 = scmp.lt.s32.totalorder %s435_s11, 3  ;;  %p579_p5 = scmp.ge.s32.totalorder %s435_s11, 1 }
  0x28   : > { %p120_p13 = pnand %p579_p5, %p578_p1 }
  0x29   : > { %s125_s16 = sand.u32 (!%p120_p13), 1, %s419_s7  }
  0x2a   : > { %123 = sbr.rel (%p120_p13) target bundleno = 71 (0x47), region = 24  ;;  %s292_s19 = sshll.u32 (!%p120_p13), %s125_s16, 3 }
  0x2b   : > { %s126_s20 = scalar_lea.sflag (!%p120_p13), [#allocation3], %s125_s16  ;;  %s129_s21 = scalar_lea.vmem (!%p120_p13), [#allocation2], %s292_s19 }
  0x31   : > { %410 = dma.done.wait (%p491_p7), %s126_s20, 128  }
  0x32   : > { %412 = vsyncadd (%p491_p7), %s126_s20, 4294967168  ;;  %vm167_vm0 = vcmask 1043456   ;;  %v163_v0 = vld [vmem:[%s129_s21] sm:$0xff]  ;;  %p154_p9 = scmp.lt.s32.totalorder %s427_s9, 1 }
  0x33   : > { %v165_v1 = vcombine.high %v163_v0, %v163_v0  ;;  %v168_v2 = vsel %vm167_vm0, %v163_v0, 0.0 }
  0x34   : > { %v169_v3 = vrot.slane %v168_v2, 4  ;;  %s588_s9 = smov (!%p154_p9, %s427_s9), 1 }
  0x35   : > { %v175_v4 = vsel %vm167_vm0, %v165_v1, 0.0  ;;  %s298_s17 = sshll.u32 %s588_s9, 3 }
  0x36   : > { %v170_v5 = vadd.f32 %v169_v3, %v168_v2  ;;  %v176_v6 = vrot.slane %v175_v4, 4  ;;  %s161_s24 = scalar_lea.vmem %s574_s1, %s298_s17 }
  0x38   : > { %v171_v7 = vrot.slane %v170_v5, 2  ;;  %v177_v8 = vadd.f32 %v176_v6, %v175_v4 }
  0x3a   : > { %v172_v9 = vadd.f32 %v171_v7, %v170_v5  ;;  %v178_v10 = vrot.slane %v177_v8, 2 }
  0x3c   : > { %v173_v11 = vrot.slane %v172_v9, 1  ;;  %v179_v12 = vadd.f32 %v178_v10, %v177_v8 }
  0x3e   : > { %v174_v13 = vadd.f32 %v173_v11, %v172_v9  ;;  %v180_v14 = vrot.slane %v179_v12, 1 }
  0x40   : > { %v181_v15 = vadd.f32 %v180_v14, %v179_v12  ;;  %v182_v16 = vmul.f32 0.25, %v174_v13 }
  0x42   : > { %v183_v17 = vmul.f32 0.25, %v181_v15 }
  0x44   : > { %v186_v18 = vcombine.low %v182_v16, %v183_v17 }
  0x46   : > { %188 = vst [vmem:[%s161_s24] sm:$0x77] %v186_v18 }
  0x47 PF: > { %s14_s11 = sadd.s32 1, %s435_s11   ;;  %s580_s6 = smov %s419_s7 }
  0x48   : > { %p11_p7 = scmp.ge.s32.totalorder %s14_s11, 4   ;;  %s581_s7 = smov %s423_s8 }
  0x49   : > { %s582_s8 = smov %s497_s18  ;;  %s583_s9 = smov %s431_s10 }
  0x4a   : > { %s584_s10 = smov %s586_s13  ;;  %13 = sbr.rel (!%p11_p7) target bundleno = 4 (0x4), region = 64 }
  0x51   :  { %219 = vsyncpa [#allocation3], 1 }
  0x52   :  { %221 = vsyncpa [#allocation3 + $0x1], 1 }

</bundles_post_ra>
